<compile_context>
chip_gen: v7x
topology: tpu7x:2x2x1
jax: 0.10.0
libtpu: 0.0.40
codegen_flags: <defaults>
</compile_context>

<pallas_src>
import functools

import jax
import jax.numpy as jnp
import numpy as np
from jax import lax
from jax.experimental import pallas as pl
from jax.experimental.pallas import tpu as pltpu


def _round_up(x, m):
    return ((x + m - 1) // m) * m


def _kg_loss_kernel(head_ref, rel_ref, bias_ref, cands_ref, rmat_ref, smat_ref,
                    out_ref, *, l2_lambda, valid_rows, block_rows):
    i = pl.program_id(0)

    head = head_ref[...].astype(jnp.float32)       # [TB, E]
    rel = rel_ref[...].astype(jnp.float32)         # [1, E]
    bias = bias_ref[...].astype(jnp.float32)       # [TB, 1]
    cands = cands_ref[...].astype(jnp.float32)     # [TB, C*E]  (candidate 0 = tail)
    rmat = rmat_ref[...]                           # [E, C*E]   replicate selector
    smat = smat_ref[...]                           # [C*E, C]   segment-sum selector

    example = head + rel                           # [TB, E]

    # Replicate `example` across the C candidates lane-dense via the MXU
    # (avoids in-kernel tile/concat of a 32-lane slice).
    example_rep = jnp.dot(example, rmat, preferred_element_type=jnp.float32)   # [TB, C*E]

    # Fused pos+neg logits: candidate-segmented E-reduction on the MXU
    # (M = TB rows presented to the MXU, no per-row matvecs, no XLU reduce).
    logits = jnp.dot(example_rep * cands, smat,
                     preferred_element_type=jnp.float32) + bias                # [TB, C]

    # Per-candidate squared norms (candidate 0 = tail, 1.. = negatives).
    csq = jnp.dot(cands * cands, smat, preferred_element_type=jnp.float32)     # [TB, C]

    # Stable softplus loss:  pos -> softplus(-logit0),  neg -> softplus(logit_c).
    cand_idx = lax.broadcasted_iota(jnp.int32, logits.shape, 1)
    z = jnp.where(cand_idx == 0, -logits, logits)
    sp = jnp.maximum(z, 0.0) + jnp.log(1.0 + jnp.exp(-jnp.abs(z)))
    loss_rows = jnp.sum(sp, axis=-1, keepdims=True)                            # [TB, 1]

    # L2 terms: ||head_b|| + ||tail_b|| + ||neg_b||_F (Frobenius over (N, E)).
    head_n = jnp.sqrt(jnp.sum(head * head, axis=-1, keepdims=True))            # [TB, 1]
    tail_sq = csq[:, 0:1]                                                      # [TB, 1]
    csq_tot = jnp.sum(csq, axis=-1, keepdims=True)                             # [TB, 1]
    neg_n = jnp.sqrt(jnp.maximum(csq_tot - tail_sq, 0.0))
    l2_rows = head_n + jnp.sqrt(tail_sq) + neg_n                               # [TB, 1]

    # Mask rows added by padding B up to a multiple of the row tile.
    row_idx = i * block_rows + lax.broadcasted_iota(jnp.int32, (block_rows, 1), 0)
    mask = (row_idx < valid_rows).astype(jnp.float32)

    per_row = (loss_rows + l2_lambda * l2_rows) * mask                         # [TB, 1]

    # Resident (1,1) accumulator output (same block for every grid step).
    @pl.when(i == 0)
    def _():
        out_ref[...] = jnp.zeros_like(out_ref)

    out_ref[...] += jnp.sum(per_row, axis=0, keepdims=True)


def kg_neg_loss_pallas(head_vec, tail_vec, rel_vec, rel_bias, neg_vec,
                       l2_lambda, *, block_rows=256):
    """loss = sum_b [softplus(-pos_b) + sum_n softplus(neg_bn)]
              + l2_lambda * sum_b (||head_b|| + ||tail_b|| + ||neg_b||_F)."""
    B, E = head_vec.shape
    N = neg_vec.shape[1]
    C = N + 1

    # Candidate slab: tail (positive) first, then the N negatives, flattened
    # lane-dense to [B, C*E] so the kernel's elementwise work uses full lanes.
    cands = jnp.concatenate([tail_vec[:, None, :], neg_vec], axis=1)           # [B, C, E]
    cands = cands.reshape(B, C * E).astype(head_vec.dtype)

    # Row tile: multiple of 8 sublanes; pad B up to a multiple of it.
    TB = min(block_rows, _round_up(B, 8))
    B_pad = _round_up(B, TB)
    if B_pad != B:
        pad = ((0, B_pad - B), (0, 0))
        head_vec = jnp.pad(head_vec, pad)
        rel_bias = jnp.pad(rel_bias, pad)
        cands = jnp.pad(cands, pad)

    # Constant selector matrices (index_map -> (0,0): resident in VMEM).
    #   rmat[e, c*E + e'] = [e == e']   -> example @ rmat replicates example C times.
    #   smat[c*E + e, c'] = [c == c']   -> (.) @ smat sums each E-segment.
    rmat = jnp.tile(jnp.eye(E, dtype=jnp.float32), (1, C))                     # [E, C*E]
    smat = jnp.repeat(jnp.eye(C, dtype=jnp.float32), E, axis=0)                # [C*E, C]

    grid = (B_pad // TB,)
    kernel = functools.partial(_kg_loss_kernel, l2_lambda=float(l2_lambda),
                               valid_rows=B, block_rows=TB)
    out = pl.pallas_call(
        kernel,
        out_shape=jax.ShapeDtypeStruct((1, 1), jnp.float32),
        grid=grid,
        in_specs=[
            pl.BlockSpec((TB, E), lambda i: (i, 0)),           # head rows
            pl.BlockSpec((1, E), lambda i: (0, 0)),            # relation vector
            pl.BlockSpec((TB, 1), lambda i: (i, 0)),           # relation bias rows
            pl.BlockSpec((TB, C * E), lambda i: (i, 0)),       # candidates (tail+negs)
            pl.BlockSpec((E, C * E), lambda i: (0, 0)),        # replicate selector
            pl.BlockSpec((C * E, C), lambda i: (0, 0)),        # segment-sum selector
        ],
        out_specs=pl.BlockSpec((1, 1), lambda i: (0, 0)),
        compiler_params=pltpu.CompilerParams(
            dimension_semantics=("arbitrary",)),               # accumulator axis
    )(head_vec, rel_vec, rel_bias, cands, rmat, smat)
    return out[0, 0]


class KnowledgeEmbeddingPallas:
    """Synthetic, single-relation version of preprocess/train_transe_kg.KnowledgeEmbedding."""

    def __init__(self, key, head_vocab, tail_vocab, embed_size,
                 num_neg_samples, l2_lambda):
        self.embed_size = embed_size
        self.num_neg_samples = num_neg_samples
        self.l2_lambda = l2_lambda
        initrange = 0.5 / embed_size
        k1, k2, k3 = jax.random.split(key, 3)
        # _entity_embedding: [vocab+1, E] uniform(-initrange, initrange)
        self.head_embed = jax.random.uniform(
            k1, (head_vocab + 1, embed_size), jnp.float32, -initrange, initrange)
        self.tail_embed = jax.random.uniform(
            k2, (tail_vocab + 1, embed_size), jnp.float32, -initrange, initrange)
        # _relation_embedding: [1, E] uniform
        self.rel_vec = jax.random.uniform(
            k3, (1, embed_size), jnp.float32, -initrange, initrange)
        # _relation_bias: zeros [vocab+1, 1]
        self.rel_bias = jnp.zeros((tail_vocab + 1, 1), jnp.float32)
        # _make_distrib: power(ones, 0.75) normalized
        d = jnp.power(jnp.ones((tail_vocab,), jnp.float32), 0.75)
        self.et_distrib = d / jnp.sum(d)

    def _gather_inputs(self, key, head_idxs, tail_idxs):
        B = head_idxs.shape[0]
        head_vec = jnp.take(self.head_embed, head_idxs, axis=0)          # [B, E]
        tail_vec = jnp.take(self.tail_embed, tail_idxs, axis=0)          # [B, E]
        bias = jnp.take(self.rel_bias, tail_idxs, axis=0)                # [B, 1]
        # TODO(synk): torch.multinomial has no Pallas equivalent; sampling is
        # done in JAX glue (jax.random.categorical over et_distrib).
        # The N-way duplicated negative gather is also done in glue; moving it
        # in-kernel (scalar-prefetched neg_idx + manual DMA from an HBM-resident
        # tail_embed) would remove the N-fold HBM duplication at scale.
        neg_idx = jax.random.categorical(
            key, jnp.log(self.et_distrib), shape=(B, self.num_neg_samples))
        neg_vec = jnp.take(self.tail_embed, neg_idx.reshape(-1), axis=0)
        neg_vec = neg_vec.reshape(B, self.num_neg_samples, self.embed_size)
        return head_vec, tail_vec, bias, neg_vec

    def forward(self, key, head_idxs, tail_idxs):
        head_vec, tail_vec, bias, neg_vec = self._gather_inputs(
            key, head_idxs, tail_idxs)
        return kg_neg_loss_pallas(head_vec, tail_vec, self.rel_vec, bias,
                                  neg_vec, self.l2_lambda)

    def forward_ref(self, key, head_idxs, tail_idxs):
        """Pure-JAX reference matching kg_neg_loss + compute_loss semantics."""
        head_vec, tail_vec, bias, neg_vec = self._gather_inputs(
            key, head_idxs, tail_idxs)
        example = head_vec + self.rel_vec
        pos_logits = jnp.sum(example * tail_vec, axis=-1) + bias[:, 0]
        pos_loss = -jnp.log(jax.nn.sigmoid(pos_logits))
        neg_logits = jnp.einsum('be,bne->bn', example, neg_vec) + bias
        neg_loss = jnp.sum(-jnp.log(jax.nn.sigmoid(-neg_logits)), axis=-1)
        loss = jnp.sum(pos_loss + neg_loss)
        l2 = (jnp.sum(jnp.linalg.norm(head_vec, axis=-1))
              + jnp.sum(jnp.linalg.norm(tail_vec, axis=-1))
              + jnp.sum(jnp.sqrt(jnp.sum(neg_vec ** 2, axis=(1, 2)))))
        return loss + self.l2_lambda * l2


if __name__ == "__main__":
    key = jax.random.PRNGKey(0)
    k_param, k_idx_h, k_idx_t, k_neg = jax.random.split(key, 4)

    B = 8              # number of (head, relation, tail) triples in the batch
    E = 32             # embed_size
    N = 16             # num_neg_samples
    HEAD_VOCAB = 50
    TAIL_VOCAB = 60
    L2_LAMBDA = 1e-3

    model = KnowledgeEmbeddingPallas(k_param, HEAD_VOCAB, TAIL_VOCAB, E, N,
                                     L2_LAMBDA)

    head_idxs = jax.random.randint(k_idx_h, (B,), 0, HEAD_VOCAB)
    tail_idxs = jax.random.randint(k_idx_t, (B,), 0, TAIL_VOCAB)

    loss = model.forward(k_neg, head_idxs, tail_idxs)
    loss = jax.block_until_ready(loss)

    loss_ref = jax.block_until_ready(model.forward_ref(k_neg, head_idxs, tail_idxs))
    np.testing.assert_allclose(np.asarray(loss), np.asarray(loss_ref),
                               rtol=1e-5, atol=1e-5)

    print("KERNEL_OK")
</pallas_src>

<mosaic_0001>
module attributes {stable_mosaic.version = 11 : i64} {
  func.func @_kg_loss_kernel(%arg0: i32, %arg1: memref<8x32xf32, #tpu.memory_space<vmem>>, %arg2: memref<1x32xf32, #tpu.memory_space<vmem>>, %arg3: memref<8x1xf32, #tpu.memory_space<vmem>>, %arg4: memref<8x544xf32, #tpu.memory_space<vmem>>, %arg5: memref<32x544xf32, #tpu.memory_space<vmem>>, %arg6: memref<544x17xf32, #tpu.memory_space<vmem>>, %arg7: memref<1x1xf32, #tpu.memory_space<vmem>>) attributes {dimension_semantics = [#tpu.dimension_semantics<arbitrary>], iteration_bounds = array<i64: 1>, scalar_prefetch = 0 : i64, scratch_operands = 0 : i64, tpu.core_type = #tpu.core_type<tc>, window_params = [{transform_indices = @transform_0, window_bounds = array<i64: 8, 32>}, {pipeline_mode = #tpu.pipeline_mode<synchronous>, transform_indices = @transform_1, window_bounds = array<i64: 1, 32>}, {transform_indices = @transform_2, window_bounds = array<i64: 8, 1>}, {transform_indices = @transform_3, window_bounds = array<i64: 8, 544>}, {pipeline_mode = #tpu.pipeline_mode<synchronous>, transform_indices = @transform_4, window_bounds = array<i64: 32, 544>}, {pipeline_mode = #tpu.pipeline_mode<synchronous>, transform_indices = @transform_5, window_bounds = array<i64: 544, 17>}, {pipeline_mode = #tpu.pipeline_mode<synchronous>, transform_indices = @transform_6, window_bounds = array<i64: 1, 1>}]} {
    %c0 = arith.constant 0 : index
    %c0_0 = arith.constant 0 : index
    %0 = vector.load %arg1[%c0, %c0_0] : memref<8x32xf32, #tpu.memory_space<vmem>>, vector<8x32xf32>
    %c0_1 = arith.constant 0 : index
    %c0_2 = arith.constant 0 : index
    %1 = vector.load %arg2[%c0_1, %c0_2] : memref<1x32xf32, #tpu.memory_space<vmem>>, vector<1x32xf32>
    %c0_3 = arith.constant 0 : index
    %c0_4 = arith.constant 0 : index
    %2 = vector.load %arg3[%c0_3, %c0_4] : memref<8x1xf32, #tpu.memory_space<vmem>>, vector<8x1xf32>
    %c0_5 = arith.constant 0 : index
    %c0_6 = arith.constant 0 : index
    %3 = vector.load %arg4[%c0_5, %c0_6] : memref<8x544xf32, #tpu.memory_space<vmem>>, vector<8x544xf32>
    %c0_7 = arith.constant 0 : index
    %c0_8 = arith.constant 0 : index
    %4 = vector.load %arg5[%c0_7, %c0_8] : memref<32x544xf32, #tpu.memory_space<vmem>>, vector<32x544xf32>
    %c0_9 = arith.constant 0 : index
    %c0_10 = arith.constant 0 : index
    %5 = vector.load %arg6[%c0_9, %c0_10] : memref<544x17xf32, #tpu.memory_space<vmem>>, vector<544x17xf32>
    %6 = vector.broadcast %1 : vector<1x32xf32> to vector<8x32xf32>
    %7 = arith.addf %0, %6 : vector<8x32xf32>
    %cst = arith.constant dense<0.000000e+00> : vector<8x544xf32>
    %8 = tpu.matmul %7, %4, %cst {dimension_numbers = #tpu.dot_dimension_numbers<[1], [0], [0], [1], [0, 0, 1, 1], [], []>} : vector<8x32xf32>, vector<32x544xf32>, vector<8x544xf32> -> vector<8x544xf32>
    %9 = arith.mulf %8, %3 : vector<8x544xf32>
    %cst_11 = arith.constant dense<0.000000e+00> : vector<8x17xf32>
    %10 = tpu.matmul %9, %5, %cst_11 {dimension_numbers = #tpu.dot_dimension_numbers<[1], [0], [0], [1], [0, 0, 1, 1], [], []>} : vector<8x544xf32>, vector<544x17xf32>, vector<8x17xf32> -> vector<8x17xf32>
    %11 = vector.broadcast %2 : vector<8x1xf32> to vector<8x17xf32>
    %12 = arith.addf %10, %11 : vector<8x17xf32>
    %13 = arith.mulf %3, %3 : vector<8x544xf32>
    %cst_12 = arith.constant dense<0.000000e+00> : vector<8x17xf32>
    %14 = tpu.matmul %13, %5, %cst_12 {dimension_numbers = #tpu.dot_dimension_numbers<[1], [0], [0], [1], [0, 0, 1, 1], [], []>} : vector<8x544xf32>, vector<544x17xf32>, vector<8x17xf32> -> vector<8x17xf32>
    %15 = tpu.iota {dimensions = array<i32: 1>} : vector<8x17xi32>
    %c0_i32 = arith.constant 0 : i32
    %16 = vector.broadcast %c0_i32 : i32 to vector<8x17xi32>
    %17 = arith.cmpi eq, %15, %16 : vector<8x17xi32>
    %cst_13 = arith.constant 0.000000e+00 : f32
    %18 = vector.broadcast %cst_13 : f32 to vector<8x17xf32>
    %19 = arith.subf %18, %12 : vector<8x17xf32>
    %20 = arith.select %17, %19, %12 : vector<8x17xi1>, vector<8x17xf32>
    %cst_14 = arith.constant 0.000000e+00 : f32
    %21 = vector.broadcast %cst_14 : f32 to vector<8x17xf32>
    %22 = arith.maximumf %20, %21 : vector<8x17xf32>
    %23 = math.absf %20 : vector<8x17xf32>
    %cst_15 = arith.constant 0.000000e+00 : f32
    %24 = vector.broadcast %cst_15 : f32 to vector<8x17xf32>
    %25 = arith.subf %24, %23 : vector<8x17xf32>
    %26 = math.exp %25 : vector<8x17xf32>
    %cst_16 = arith.constant 1.000000e+00 : f32
    %27 = vector.broadcast %cst_16 : f32 to vector<8x17xf32>
    %28 = arith.addf %27, %26 : vector<8x17xf32>
    %29 = math.log %28 : vector<8x17xf32>
    %30 = arith.addf %22, %29 : vector<8x17xf32>
    %cst_17 = arith.constant dense<0.000000e+00> : vector<8xf32>
    %31 = vector.multi_reduction <add>, %30, %cst_17 [1] : vector<8x17xf32> to vector<8xf32>
    %32 = vector.shape_cast %31 : vector<8xf32> to vector<8x1xf32>
    %33 = arith.mulf %0, %0 : vector<8x32xf32>
    %cst_18 = arith.constant dense<0.000000e+00> : vector<8xf32>
    %34 = vector.multi_reduction <add>, %33, %cst_18 [1] : vector<8x32xf32> to vector<8xf32>
    %35 = vector.shape_cast %34 : vector<8xf32> to vector<8x1xf32>
    %36 = math.sqrt %35 : vector<8x1xf32>
    %37 = vector.extract_strided_slice %14 {offsets = [0, 0], sizes = [8, 1], strides = [1, 1]} : vector<8x17xf32> to vector<8x1xf32>
    %cst_19 = arith.constant dense<0.000000e+00> : vector<8xf32>
    %38 = vector.multi_reduction <add>, %14, %cst_19 [1] : vector<8x17xf32> to vector<8xf32>
    %39 = vector.shape_cast %38 : vector<8xf32> to vector<8x1xf32>
    %40 = arith.subf %39, %37 : vector<8x1xf32>
    %cst_20 = arith.constant 0.000000e+00 : f32
    %41 = vector.broadcast %cst_20 : f32 to vector<8x1xf32>
    %42 = arith.maximumf %40, %41 : vector<8x1xf32>
    %43 = math.sqrt %42 : vector<8x1xf32>
    %44 = math.sqrt %37 : vector<8x1xf32>
    %45 = arith.addf %36, %44 : vector<8x1xf32>
    %46 = arith.addf %45, %43 : vector<8x1xf32>
    %c8_i32 = arith.constant 8 : i32
    %47 = arith.muli %arg0, %c8_i32 : i32
    %48 = tpu.iota {dimensions = array<i32: 0>} : vector<8x1xi32>
    %49 = vector.broadcast %47 : i32 to vector<8x1xi32>
    %50 = arith.addi %49, %48 : vector<8x1xi32>
    %c8_i32_21 = arith.constant 8 : i32
    %51 = vector.broadcast %c8_i32_21 : i32 to vector<8x1xi32>
    %52 = arith.cmpi slt, %50, %51 : vector<8x1xi32>
    %53 = arith.extui %52 : vector<8x1xi1> to vector<8x1xi32>
    %54 = arith.sitofp %53 : vector<8x1xi32> to vector<8x1xf32>
    %cst_22 = arith.constant 1.000000e-03 : f32
    %55 = vector.broadcast %cst_22 : f32 to vector<8x1xf32>
    %56 = arith.mulf %55, %46 : vector<8x1xf32>
    %57 = arith.addf %32, %56 : vector<8x1xf32>
    %58 = arith.mulf %57, %54 : vector<8x1xf32>
    %c0_i32_23 = arith.constant 0 : i32
    %59 = arith.cmpi eq, %arg0, %c0_i32_23 : i32
    %60 = arith.extui %59 : i1 to i32
    %c0_i32_24 = arith.constant 0 : i32
    %61 = arith.cmpi ne, %60, %c0_i32_24 : i32
    scf.if %61 {
      %cst_30 = arith.constant 0.000000e+00 : f32
      %67 = vector.broadcast %cst_30 : f32 to vector<1x1xf32>
      %c0_31 = arith.constant 0 : index
      %c0_32 = arith.constant 0 : index
      %68 = vector.load %arg7[%c0_31, %c0_32] : memref<1x1xf32, #tpu.memory_space<vmem>>, vector<1x1xf32>
      tpu.vector_store %arg7[%c0_31, %c0_32], %67 {strides = array<i32>} : memref<1x1xf32, #tpu.memory_space<vmem>>, vector<1x1xf32>,
    } else {
    }
    %c0_25 = arith.constant 0 : index
    %c0_26 = arith.constant 0 : index
    %62 = vector.load %arg7[%c0_25, %c0_26] : memref<1x1xf32, #tpu.memory_space<vmem>>, vector<1x1xf32>
    %cst_27 = arith.constant dense<0.000000e+00> : vector<1xf32>
    %63 = vector.multi_reduction <add>, %58, %cst_27 [0] : vector<8x1xf32> to vector<1xf32>
    %64 = vector.shape_cast %63 : vector<1xf32> to vector<1x1xf32>
    %65 = arith.addf %62, %64 : vector<1x1xf32>
    %c0_28 = arith.constant 0 : index
    %c0_29 = arith.constant 0 : index
    %66 = vector.load %arg7[%c0_28, %c0_29] : memref<1x1xf32, #tpu.memory_space<vmem>>, vector<1x1xf32>
    tpu.vector_store %arg7[%c0_28, %c0_29], %65 {strides = array<i32>} : memref<1x1xf32, #tpu.memory_space<vmem>>, vector<1x1xf32>,
    return
  }
  func.func @transform_0(%arg0: i32) -> (i32, i32) {
    %c0_i32 = arith.constant 0 : i32
    %c0_i32_0 = arith.constant 0 : i32
    return %arg0, %c0_i32 : i32, i32
  }
  func.func @transform_1(%arg0: i32) -> (i32, i32) {
    %c0_i32 = arith.constant 0 : i32
    %c0_i32_0 = arith.constant 0 : i32
    %c0_i32_1 = arith.constant 0 : i32
    return %c0_i32, %c0_i32_0 : i32, i32
  }
  func.func @transform_2(%arg0: i32) -> (i32, i32) {
    %c0_i32 = arith.constant 0 : i32
    %c0_i32_0 = arith.constant 0 : i32
    return %arg0, %c0_i32 : i32, i32
  }
  func.func @transform_3(%arg0: i32) -> (i32, i32) {
    %c0_i32 = arith.constant 0 : i32
    %c0_i32_0 = arith.constant 0 : i32
    return %arg0, %c0_i32 : i32, i32
  }
  func.func @transform_4(%arg0: i32) -> (i32, i32) {
    %c0_i32 = arith.constant 0 : i32
    %c0_i32_0 = arith.constant 0 : i32
    %c0_i32_1 = arith.constant 0 : i32
    return %c0_i32, %c0_i32_0 : i32, i32
  }
  func.func @transform_5(%arg0: i32) -> (i32, i32) {
    %c0_i32 = arith.constant 0 : i32
    %c0_i32_0 = arith.constant 0 : i32
    %c0_i32_1 = arith.constant 0 : i32
    return %c0_i32, %c0_i32_0 : i32, i32
  }
  func.func @transform_6(%arg0: i32) -> (i32, i32) {
    %c0_i32 = arith.constant 0 : i32
    %c0_i32_0 = arith.constant 0 : i32
    %c0_i32_1 = arith.constant 0 : i32
    return %c0_i32, %c0_i32_0 : i32, i32
  }
}

</mosaic_0001>

<bundles_post_ra>
// kernel: tpu_custom_call.1
= control target key start
LH: loop header
LB: loop body
LE: loop exit
PB: predicated region body
PF: predicated region fallthrough
CT: control target
= control target key end

     0   :  { %v1273_v7 = vmov 0.0   ;;  %vm127_vm0 = vcmask 261120   ;;  %v1274_v37 = vmov 0.0|0.0   ;;  %vm1275_vm1 = vmmov 0   ;;  %s1774_s0 = inlined_call_operand.vmem [shape: f32[8,32], index: 0, kind: input, shape index: {}]   ;;  %s1775_s1 = inlined_call_operand.vmem [shape: f32[1,32], index: 1, kind: input, shape index: {}]   ;;  %s1776_s2 = inlined_call_operand.vmem [shape: f32[8,1], index: 2, kind: input, shape index: {}]   ;;  %s1777_s3 = inlined_call_operand.vmem [shape: f32[8,544], index: 3, kind: input, shape index: {}]   ;;  %s1778_s4 = inlined_call_operand.vmem [shape: f32[32,544], index: 4, kind: input, shape index: {}]   ;;  %s1779_s5 = inlined_call_operand.vmem [shape: f32[544,17], index: 5, kind: input, shape index: {}]   ;;  %s1780_s6 = inlined_call_operand.hbm [shape: f32[1,1], index: 6, kind: output, shape index: {}]  }
   0x1   :  { %v33_v0 = vld [vmem:[%s1778_s4 + $0x8] sm:$0xff]  ;;  %v38_v1 = vld [vmem:[%s1778_s4 + $0x30] sm:$0xff]  ;;  %v32_v2 = vld [vmem:[%s1778_s4] sm:$0xff]  ;;  %195 = vmatprep.mubr.f32.mxu0 %v1273_v7  ;;  %266 = vmatprep.mubr.f32.mxu1 %v1273_v7 }
   0x2   :  { %v1071_v3 = vpack.c.bf16 %v38_v1, %v33_v0  ;;  %v37_v4 = vld [vmem:[%s1778_s4 + $0x28] sm:$0xff]  ;;  %v35_v5 = vld [vmem:[%s1778_s4 + $0x18] sm:$0xff]  ;;  %v40_v6 = vld [vmem:[%s1778_s4 + $0x40] sm:$0xff] }
   0x3   :  { %v1073_v8 = vpack.c.bf16 %v37_v4, %v32_v2  ;;  %v1079_v9 = vpack.c.bf16 %v40_v6, %v35_v5  ;;  %v34_v10 = vld [vmem:[%s1778_s4 + $0x10] sm:$0xff]  ;;  %v39_v11 = vld [vmem:[%s1778_s4 + $0x38] sm:$0xff]  ;;  %v48_v14 = vld [vmem:[%s1778_s4 + $0x80] sm:$0xff] }
   0x4   :  { %v43_v12 = vld [vmem:[%s1778_s4 + $0x58] sm:$0xff]  ;;  %1072 = vmatprep.subr.bf16.mxu0 %v1071_v3  ;;  %v1081_v13 = vpack.c.bf16 %v39_v11, %v34_v10  ;;  %v42_v15 = vld [vmem:[%s1778_s4 + $0x50] sm:$0xff]  ;;  %v45_v19 = vld [vmem:[%s1778_s4 + $0x68] sm:$0xff] }
   0x5   :  { %v47_v16 = vld [vmem:[%s1778_s4 + $0x78] sm:$0xff]  ;;  %1074 = vmatpush1.bf16.msra.mxu0 %v1073_v8  ;;  %1080 = vmatprep.subr.bf16.mxu1 %v1079_v9  ;;  %v1075_v17 = vpack.c.bf16 %v48_v14, %v43_v12  ;;  %v50_v20 = vld [vmem:[%s1778_s4 + $0x90] sm:$0xff]  ;;  %v44_v21 = vld [vmem:[%s1778_s4 + $0x60] sm:$0xff] }
   0x6   :  { %v1077_v18 = vpack.c.bf16 %v47_v16, %v42_v15  ;;  %1082 = vmatpush1.bf16.msra.mxu1 %v1081_v13  ;;  %v1083_v22 = vpack.c.bf16 %v50_v20, %v45_v19  ;;  %v49_v23 = vld [vmem:[%s1778_s4 + $0x88] sm:$0xff]  ;;  %v1366_v24 = vld [vmem:[%s1774_s0] sm:$0xff]  ;;  %v46_v33 = vld [vmem:[%s1778_s4 + $0x70] sm:$0xff] }
   0x7   :  { %v877_v25 = vld [vmem:[%s1775_s1] ss:$0 sm:$0xff]  ;;  %1076 = vmatprep.subr.bf16.mxu0 %v1075_v17  ;;  %v1085_v26 = vpack.c.bf16 %v49_v23, %v44_v21  ;;  %v41_v28 = vld [vmem:[%s1778_s4 + $0x48] sm:$0xff]  ;;  %v51_v38 = vld [vmem:[%s1778_s4 + $0x98] sm:$0xff] }
   0x8   :  { %v36_v27 = vld [vmem:[%s1778_s4 + $0x20] sm:$0xff]  ;;  %1084 = vmatprep.subr.bf16.mxu1 %v1083_v22  ;;  %v126_v29 = vadd.f32 %v877_v25, %v1366_v24  ;;  %v69_v31 = vld [vmem:[%s1779_s5 + $0x88] sm:$0xff]  ;;  %v70_v39 = vld [vmem:[%s1779_s5 + $0x90] sm:$0xff]  ;;  %v1091_v47 = vpack.c.bf16 %v51_v38, %v46_v33 }
   0x9   :  { %v68_v30 = vld [vmem:[%s1779_s5 + $0x80] sm:$0xff]  ;;  %1078 = vmatpush1.bf16.msra.mxu0 %v1077_v18  ;;  %v1088_v32 = vpack.c.bf16 %v41_v28, %v36_v27  ;;  %v53_v36 = vld [vmem:[%s1779_s5 + $0x8] sm:$0xff]  ;;  %v71_v40 = vld [vmem:[%s1779_s5 + $0x98] sm:$0xff] }
   0xa   :  { %v1387_v34 = vpack.c.bf16 %v69_v31, %v68_v30  ;;  %v52_v35 = vld [vmem:[%s1779_s5] sm:$0xff]  ;;  %1086 = vmatpush1.bf16.msra.mxu1 %v1085_v26  ;;  %1087 = vmatprep.subr.bf16.mxu0 %v1274_v37  ;;  %v101_v43 = vld [vmem:[%s1779_s5 + $0x188] sm:$0xff]  ;;  %v1415_v44 = vpack.c.bf16 %v71_v40, %v70_v39  ;;  %v54_v45 = vld [vmem:[%s1779_s5 + $0x10] sm:$0xff] }
   0xb   :  { %v1406_v41 = vpack.c.bf16 %v53_v36, %v52_v35  ;;  %v100_v42 = vld [vmem:[%s1779_s5 + $0x180] sm:$0xff]  ;;  %v55_v46 = vld [vmem:[%s1779_s5 + $0x18] sm:$0xff]  ;;  %v73_v49 = vld [vmem:[%s1779_s5 + $0xa8] sm:$0xff] }
   0xc   :  { %1094 = vmatprep.subr.bf16.mxu1 %v1387_v34  ;;  %878 = vmatmul.mubr.msk.f32.vlgmr.msra.gmra.mrb[0].mxu0 %vm127_vm0, %v126_v29  ;;  %v72_v48 = vld [vmem:[%s1779_s5 + $0xa0] sm:$0xff]  ;;  %v1433_v50 = vpack.c.bf16 %v101_v43, %v100_v42  ;;  %v85_v52 = vld [vmem:[%s1779_s5 + $0x108] sm:$0xff]  ;;  %v1442_v53 = vpack.c.bf16 %v55_v46, %v54_v45  ;;  %v102_v54 = vld [vmem:[%s1779_s5 + $0x190] sm:$0xff] }
   0xd   :  { %879 = vmatmul.mubr.msk.f32.vlgmr.msra.gmra.mrb[0].mxu1 %vm127_vm0, %v126_v29  ;;  %1089 = vmatpush3.bf16.msra.mxu0 %v1088_v32  ;;  %v84_v51 = vld [vmem:[%s1779_s5 + $0x100] sm:$0xff]  ;;  %v103_v55 = vld [vmem:[%s1779_s5 + $0x198] sm:$0xff]  ;;  %v1451_v56 = vpack.c.bf16 %v73_v49, %v72_v48  ;;  %v57_v58 = vld [vmem:[%s1779_s5 + $0x28] sm:$0xff] }
   0xe   :  { %1090 = vmatprep.subr.bf16.mxu0 %v1274_v37  ;;  %1046 = vmatprep.mubr.msk.f32.mxu0 %vm1275_vm1, %v1273_v7  ;;  %v56_v57 = vld [vmem:[%s1779_s5 + $0x20] sm:$0xff]  ;;  %v1459_v59 = vpack.c.bf16 %v85_v52, %v84_v51  ;;  %v74_v60 = vld [vmem:[%s1779_s5 + $0xb0] sm:$0xff]  ;;  %v75_v61 = vld [vmem:[%s1779_s5 + $0xb8] sm:$0xff]  ;;  %v1468_v62 = vpack.c.bf16 %v103_v55, %v102_v54 }
   0xf   :  { %1096 = vmatpush3.bf16.msra.mxu1 %v1406_v41  ;;  %v86_v63 = vld [vmem:[%s1779_s5 + $0x110] sm:$0xff]  ;;  %v87_v0 = vld [vmem:[%s1779_s5 + $0x118] sm:$0xff]  ;;  %v1477_v1 = vpack.c.bf16 %v57_v58, %v56_v57  ;;  %v104_v2 = vld [vmem:[%s1779_s5 + $0x1a0] sm:$0xff]  ;;  %v1487_v4 = vpack.c.bf16 %v75_v61, %v74_v60 }
  0x10   :  { %1098 = vmatprep.subr.bf16.mxu1 %v1415_v44  ;;  %v105_v3 = vld [vmem:[%s1779_s5 + $0x1a8] sm:$0xff]  ;;  %v58_v5 = vld [vmem:[%s1779_s5 + $0x30] sm:$0xff]  ;;  %v59_v6 = vld [vmem:[%s1779_s5 + $0x38] sm:$0xff]  ;;  %v1496_v8 = vpack.c.bf16 %v87_v0, %v86_v63 }
  0x11   :  { %1092 = vmatpush3.bf16.msra.mxu0 %v1091_v47  ;;  %v76_v9 = vld [vmem:[%s1779_s5 + $0xc0] sm:$0xff]  ;;  %v77_v10 = vld [vmem:[%s1779_s5 + $0xc8] sm:$0xff]  ;;  %v1505_v11 = vpack.c.bf16 %v105_v3, %v104_v2  ;;  %v1514_v14 = vpack.c.bf16 %v59_v6, %v58_v5  ;;  %v106_v15 = vld [vmem:[%s1779_s5 + $0x1b0] sm:$0xff] }
  0x12   :  { %1126 = vmatprep.subr.bf16.mxu0 %v1433_v50  ;;  %v88_v12 = vld [vmem:[%s1779_s5 + $0x120] sm:$0xff]  ;;  %v89_v13 = vld [vmem:[%s1779_s5 + $0x128] sm:$0xff]  ;;  %v107_v16 = vld [vmem:[%s1779_s5 + $0x1b8] sm:$0xff]  ;;  %v1523_v17 = vpack.c.bf16 %v77_v10, %v76_v9 }
  0x13   :  { %1100 = vmatpush3.bf16.msra.mxu1 %v1442_v53  ;;  %v60_v18 = vld [vmem:[%s1779_s5 + $0x40] sm:$0xff]  ;;  %v61_v19 = vld [vmem:[%s1779_s5 + $0x48] sm:$0xff]  ;;  %v1532_v20 = vpack.c.bf16 %v89_v13, %v88_v12  ;;  %v78_v21 = vld [vmem:[%s1779_s5 + $0xd0] sm:$0xff]  ;;  %v1541_v23 = vpack.c.bf16 %v107_v16, %v106_v15 }
  0x14   :  { %1047 = vmatmul.mubr.msk.f32.vlgmr.msra.gmra.mrb[2].mxu0 %vm127_vm0, %v126_v29  ;;  %1102 = vmatprep.subr.bf16.mxu1 %v1451_v56  ;;  %v79_v22 = vld [vmem:[%s1779_s5 + $0xd8] sm:$0xff]  ;;  %v90_v25 = vld [vmem:[%s1779_s5 + $0x130] sm:$0xff] }
  0x15   :  { %1128 = vmatpush3.bf16.msra.mxu0 %v1459_v59  ;;  %v91_v26 = vld [vmem:[%s1779_s5 + $0x138] sm:$0xff] }
  0x16   :  { %1130 = vmatprep.subr.bf16.mxu0 %v1468_v62 }
  0x17   :  { %1104 = vmatpush3.bf16.msra.mxu1 %v1477_v1 }
  0x18   :  { %1106 = vmatprep.subr.bf16.mxu1 %v1487_v4 }
  0x19   :  { %1132 = vmatpush3.bf16.msra.mxu0 %v1496_v8 }
  0x1a   :  { %1134 = vmatprep.subr.bf16.mxu0 %v1505_v11 }
  0x1b   :  { %11 = vsyncpa [#allocation3], 0  ;;  %1108 = vmatpush3.bf16.msra.mxu1 %v1514_v14  ;;  %v1550_v27 = vpack.c.bf16 %v61_v19, %v60_v18  ;;  %v108_v28 = vld [vmem:[%s1779_s5 + $0x1c0] sm:$0xff]  ;;  %v109_v29 = vld [vmem:[%s1779_s5 + $0x1c8] sm:$0xff]  ;;  %v1559_v30 = vpack.c.bf16 %v79_v22, %v78_v21  ;;  %v1568_v33 = vpack.c.bf16 %v91_v26, %v90_v25  ;;  %v802_v25 = vmul.f32 %v1366_v24, %v1366_v24 }
  0x1c   :  { %1110 = vmatprep.subr.bf16.mxu1 %v1523_v17  ;;  %v62_v31 = vld [vmem:[%s1779_s5 + $0x50] sm:$0xff]  ;;  %v63_v32 = vld [vmem:[%s1779_s5 + $0x58] sm:$0xff]  ;;  %v80_v35 = vld [vmem:[%s1779_s5 + $0xe0] sm:$0xff]  ;;  %v1577_v38 = vpack.c.bf16 %v109_v29, %v108_v28  ;;  %v1276_v26 = vmov 0   ;;  %vm798_vm3 = vcmask 138240   ;;  %vm849_vm4 = vcmask 0  }
  0x1d   :  { %1136 = vmatpush3.bf16.msra.mxu0 %v1532_v20  ;;  %v81_v36 = vld [vmem:[%s1779_s5 + $0xe8] sm:$0xff]  ;;  %v92_v39 = vld [vmem:[%s1779_s5 + $0x140] sm:$0xff]  ;;  %v1586_v42 = vpack.c.bf16 %v63_v32, %v62_v31  ;;  %v110_v43 = vld [vmem:[%s1779_s5 + $0x1d0] sm:$0xff]  ;;  %1238 = vset.pattern.permute.xlu0 %v1276_v26  ;;  %v803_v28 = vsel %vm127_vm0, %v802_v25, 0.0  ;;  %850 = vst.msk [vmem:[#allocation2] sm:$0x1] %vm849_vm4, %v1273_v7 }
  0x1e   :  { %1138 = vmatprep.subr.bf16.mxu0 %v1541_v23  ;;  %v93_v40 = vld [vmem:[%s1779_s5 + $0x148] sm:$0xff]  ;;  %v111_v45 = vld [vmem:[%s1779_s5 + $0x1d8] sm:$0xff]  ;;  %v1595_v46 = vpack.c.bf16 %v81_v36, %v80_v35  ;;  %v64_v47 = vld [vmem:[%s1779_s5 + $0x60] sm:$0xff]  ;;  %804 = vadd.xlane.f32.xlu1 %v803_v28  ;;  %vm852_vm11 = vcmask 7168  }
  0x1f   :  { %1112 = vmatpush3.bf16.msra.mxu1 %v1550_v27  ;;  %v65_v48 = vld [vmem:[%s1779_s5 + $0x68] sm:$0xff]  ;;  %v1604_v49 = vpack.c.bf16 %v93_v40, %v92_v39  ;;  %v1607_v51 = vpack.c.bf16 %v111_v45, %v110_v43  ;;  %v94_v52 = vld [vmem:[%s1779_s5 + $0x150] sm:$0xff]  ;;  %v95_v54 = vld [vmem:[%s1779_s5 + $0x158] sm:$0xff] }
  0x20   :  { %1114 = vmatprep.subr.bf16.mxu1 %v1559_v30  ;;  %v1616_v55 = vpack.c.bf16 %v65_v48, %v64_v47  ;;  %v112_v57 = vld [vmem:[%s1779_s5 + $0x1e0] sm:$0xff]  ;;  %v113_v58 = vld [vmem:[%s1779_s5 + $0x1e8] sm:$0xff]  ;;  %v1626_v60 = vpack.c.bf16 %v95_v54, %v94_v52  ;;  %v82_v63 = vld [vmem:[%s1779_s5 + $0xf0] sm:$0xff] }
  0x21   :  { %1140 = vmatpush3.bf16.msra.mxu0 %v1568_v33  ;;  %v1629_v61 = vpack.c.bf16 %v113_v58, %v112_v57  ;;  %v83_v0 = vld [vmem:[%s1779_s5 + $0xf8] sm:$0xff]  ;;  %v96_v2 = vld [vmem:[%s1779_s5 + $0x160] sm:$0xff]  ;;  %v97_v5 = vld [vmem:[%s1779_s5 + $0x168] sm:$0xff] }
  0x22   :  { %1142 = vmatprep.subr.bf16.mxu0 %v1577_v38  ;;  %v1643_v3 = vpack.c.bf16 %v83_v0, %v82_v63  ;;  %v66_v6 = vld [vmem:[%s1779_s5 + $0x70] sm:$0xff]  ;;  %v67_v9 = vld [vmem:[%s1779_s5 + $0x78] sm:$0xff]  ;;  %v1654_v10 = vpack.c.bf16 %v97_v5, %v96_v2  ;;  %v26_v22 = vld [vmem:[%s1776_s2] sm:$0xff] }
  0x23   :  { %1116 = vmatpush3.bf16.msra.mxu1 %v1586_v42  ;;  %v1656_v12 = vpack.c.bf16 %v67_v9, %v66_v6  ;;  %v114_v13 = vld [vmem:[%s1779_s5 + $0x1f0] sm:$0xff]  ;;  %v115_v15 = vld [vmem:[%s1779_s5 + $0x1f8] sm:$0xff]  ;;  %350 = vperm.xlu0 %1238, %v26_v22   ;;  %v28_v29 = vld [vmem:[%s1777_s3 + $0x8] sm:$0xff] }
  0x24   :  { %1118 = vmatprep.subr.bf16.mxu1 %v1595_v46  ;;  %v1667_v16 = vpack.c.bf16 %v115_v15, %v114_v13  ;;  %v98_v18 = vld [vmem:[%s1779_s5 + $0x170] sm:$0xff]  ;;  %v99_v19 = vld [vmem:[%s1779_s5 + $0x178] sm:$0xff]  ;;  %v116_v31 = vld [vmem:[%s1779_s5 + $0x200] sm:$0xff]  ;;  %v567_v63 = vmul.f32 %v28_v29, %v28_v29 }
  0x25   :  { %1144 = vmatpush3.bf16.msra.mxu0 %v1604_v49  ;;  %v1675_v21 = vpack.c.bf16 %v99_v19, %v98_v18  ;;  %v117_v24 = vld [vmem:[%s1779_s5 + $0x208] sm:$0xff]  ;;  %v27_v32 = vld [vmem:[%s1777_s3] sm:$0xff]  ;;  %v30_v36 = vld [vmem:[%s1777_s3 + $0x18] sm:$0xff] }
  0x26   :  { %1146 = vmatprep.subr.bf16.mxu0 %v1607_v51  ;;  %v1158_v48 = vpack.c.bf16 %v117_v24, %v116_v31  ;;  %v118_v57 = vld [vmem:[%s1779_s5 + $0x210] sm:$0xff]  ;;  %v119_v58 = vld [vmem:[%s1779_s5 + $0x218] sm:$0xff]  ;;  %v31_v0 = vld [vmem:[%s1777_s3 + $0x20] sm:$0xff]  ;;  %v569_v13 = vmul.f32 %v30_v36, %v30_v36 }
  0x27   :  { %1120 = vmatpush3.bf16.msra.mxu1 %v1616_v55  ;;  %v1161_v2 = vpack.c.bf16 %v119_v58, %v118_v57 }
  0x28   :  { %1122 = vmatprep.subr.bf16.mxu1 %v1643_v3 }
  0x29   :  { %1148 = vmatpush3.bf16.msra.mxu0 %v1626_v60 }
  0x2a   :  { %1150 = vmatprep.subr.bf16.mxu0 %v1629_v61 }
  0x2b   :  { %1124 = vmatpush3.bf16.msra.mxu1 %v1656_v12 }
  0x2c   :  { %1157 = vmatprep.subr.bf16.mxu1 %v1274_v37 }
  0x2d   :  { %1152 = vmatpush3.bf16.msra.mxu0 %v1654_v10 }
  0x2e   :  { %1154 = vmatprep.subr.bf16.mxu0 %v1667_v16 }
  0x31   :  { %1156 = vmatpush3.bf16.msra.mxu0 %v1675_v21 }
  0x32   :  { %1164 = vmatprep.subr.bf16.mxu0 %v1387_v34  ;;  %v1693_v34 = vld [vmem:[%s1777_s3 + $0x10] sm:$0xff]  ;;  %s1277_s3 = smov [#allocation2]  }
  0x33   :  { %s869_s5 = sshll.u32 %s1277_s3, 4  ;;  %s870_s5 = int_to_ptr.vmem [resolvable:$true] %s869_s5 }
  0x34   :  { %s1249_s27 = scalar_lea.vmem %s870_s5, 16  ;;  %s1253_s28 = scalar_lea.vmem %s870_s5, 32 }
  0x35   :  { %p1250_p0 = scmp.ne.s32.totalorder %s870_s5, %s1249_s27  ;;  %p1254_p1 = scmp.lt.s32.totalorder %s870_s5, %s870_s5 }
  0x36   :  { %p1255_p2 = scmp.lt.s32.totalorder %s1253_s28, %s1249_s27 }
  0x38   :  { %p1256_p3 = por %p1255_p2, %p1254_p1 }
  0x3a   :  { %p1257_p4 = pnand %p1256_p3, %p1250_p0 }
  0xdf   :  { %v197_v35 = vpop.f32.mrb[0].mxu0 }
  0xe0   :  { %v199_v39 = vpop.f32.mrb[1].mxu0  ;;  %v268_v40 = vpop.f32.mrb[0].mxu1  ;;  %v343_v52 = vmul.f32 %v197_v35, %v27_v32 }
  0xe1   :  { %v344_v43 = vmul.f32 %v199_v39, %v28_v29  ;;  %v345_v45 = vmul.f32 %v268_v40, %v1693_v34  ;;  %v270_v47 = vpop.f32.mrb[1].mxu1 }
  0xe2   :  { %v346_v54 = vmul.f32 %v270_v47, %v30_v36 }
  0xe3   :  { %420 = vmatprep.mubr.f32.mxu1 %v344_v43 }
  0xe4   :  { %421 = vmatmul.mubr.f32.vlgmr.msra.gmra.mrb[2].mxu1 %v343_v52  ;;  %490 = vmatprep.mubr.f32.mxu0 %v346_v54 }
  0xe5   :  { %1159 = vmatpush3.bf16.msra.mxu1 %v1158_v48  ;;  %491 = vmatmul.mubr.f32.vlgmr.msra.gmra.mrb[4].mxu0 %v345_v45 }
  0xe6   :  { %1160 = vmatprep.subr.bf16.mxu1 %v1274_v37  ;;  %1166 = vmatpush3.bf16.msra.mxu0 %v1406_v41  ;;  %v566_v41 = vmul.f32 %v27_v32, %v27_v32 }
  0xe7   :  { %v339_v5 = vpop.f32.mrb[2].mxu0  ;;  %1057 = vmatprep.mubr.msk.f32.mxu1 %vm1275_vm1, %v1273_v7  ;;  %1168 = vmatprep.subr.bf16.mxu0 %v1415_v44  ;;  %v568_v44 = vmul.f32 %v1693_v34, %v1693_v34  ;;  %v805_v34 = vpop.xlane.xlu1 %804 }
  0xe8   :  { %v347_v6 = vmul.f32 %v339_v5, %v31_v0  ;;  %v1048_v9 = vpop.f32.mrb[3].mxu0  ;;  %638 = vmatprep.mubr.f32.mxu0 %v567_v63  ;;  %vm808_vm5 = vcmp.eq.f32.partialorder %v805_v34, inf  ;;  %v811_v43 = vand.u32 2147483648, %v805_v34  ;;  %vm810_vm7 = vcmp.eq.f32.partialorder %v805_v34, 0.0 }
  0xe9   :  { %1162 = vmatpush3.bf16.msra.mxu1 %v1161_v2 }
  0xea   :  { %1196 = vmatprep.subr.bf16.mxu1 %v1433_v50  ;;  %1170 = vmatpush3.bf16.msra.mxu0 %v1442_v53  ;;  %v570_v50 = vmul.f32 %v31_v0, %v31_v0 }
  0xeb   :  { %1172 = vmatprep.subr.bf16.mxu0 %v1451_v56  ;;  %v351_v56 = vpop.permute.xlu0 %350 }
  0xec   :  { %1058 = vmatmul.mubr.msk.f32.vlgmr.msra.gmra.mrb[4].mxu1 %vm127_vm0, %v347_v6 }
  0xed   :  { %1198 = vmatpush3.bf16.msra.mxu1 %v1459_v59  ;;  %708 = vmatprep.mubr.f32.mxu1 %v569_v13 }
  0xee   :  { %1200 = vmatprep.subr.bf16.mxu1 %v1468_v62  ;;  %1174 = vmatpush3.bf16.msra.mxu0 %v1477_v1 }
  0xef   :  { %1176 = vmatprep.subr.bf16.mxu0 %v1487_v4 }
  0xf1   :  { %1202 = vmatpush3.bf16.msra.mxu1 %v1496_v8 }
  0xf2   :  { %1204 = vmatprep.subr.bf16.mxu1 %v1505_v11  ;;  %1178 = vmatpush3.bf16.msra.mxu0 %v1514_v14 }
  0xf3   :  { %1180 = vmatprep.subr.bf16.mxu0 %v1523_v17 }
  0xf5   :  { %1206 = vmatpush3.bf16.msra.mxu1 %v1532_v20 }
  0xf6   :  { %1208 = vmatprep.subr.bf16.mxu1 %v1541_v23  ;;  %1182 = vmatpush3.bf16.msra.mxu0 %v1550_v27 }
  0xf7   :  { %1184 = vmatprep.subr.bf16.mxu0 %v1559_v30 }
  0xf9   :  { %1210 = vmatpush3.bf16.msra.mxu1 %v1568_v33 }
  0xfa   :  { %1212 = vmatprep.subr.bf16.mxu1 %v1577_v38  ;;  %1186 = vmatpush3.bf16.msra.mxu0 %v1586_v42 }
  0xfb   :  { %1188 = vmatprep.subr.bf16.mxu0 %v1595_v46 }
  0xfd   :  { %1214 = vmatpush3.bf16.msra.mxu1 %v1604_v49 }
  0xfe   :  { %1216 = vmatprep.subr.bf16.mxu1 %v1607_v51  ;;  %1190 = vmatpush3.bf16.msra.mxu0 %v1616_v55 }
  0xff   :  { %1192 = vmatprep.subr.bf16.mxu0 %v1643_v3 }
 0x101   :  { %1218 = vmatpush3.bf16.msra.mxu1 %v1626_v60 }
 0x102   :  { %1220 = vmatprep.subr.bf16.mxu1 %v1629_v61  ;;  %1194 = vmatpush3.bf16.msra.mxu0 %v1656_v12 }
 0x103   :  { %1227 = vmatprep.subr.bf16.mxu0 %v1274_v37 }
 0x105   :  { %1222 = vmatpush3.bf16.msra.mxu1 %v1654_v10  ;;  %639 = vmatmul.mubr.f32.vlgmr.msra.gmra.mrb[6].mxu0 %v566_v41 }
 0x106   :  { %1224 = vmatprep.subr.bf16.mxu1 %v1667_v16  ;;  %1229 = vmatpush3.bf16.msra.mxu0 %v1158_v48 }
 0x107   :  { %1230 = vmatprep.subr.bf16.mxu0 %v1274_v37  ;;  %1068 = vmatprep.mubr.msk.f32.mxu0 %vm1275_vm1, %v1273_v7  ;;  %v784_v37 = vlaneseq }
 0x109   :  { %1226 = vmatpush3.bf16.msra.mxu1 %v1675_v21  ;;  %v785_v17 = vand.u32 127, %v784_v37 }
 0x10a   :  { %1232 = vmatpush3.bf16.msra.mxu0 %v1161_v2 }
 0x10b   :  { %vm786_vm2 = vcmp.eq.s32.totalorder %v785_v17, 0 }
 0x10c   :  { %709 = vmatmul.mubr.f32.vlgmr.msra.gmra.mrb[6].mxu1 %v568_v44 }
 0x10d   :  { %1069 = vmatmul.mubr.msk.f32.vlgmr.msra.gmra.mrb[8].mxu0 %vm127_vm0, %v570_v50 }
 0x1b7   :  { %v920_v53 = vpop.f32.mrb[2].mxu1 }
 0x1b8   :  { %v921_v59 = vpop.f32.mrb[3].mxu1  ;;  %v955_v62 = vpop.f32.mrb[4].mxu0 }
 0x1b9   :  { %v922_v1 = vadd.f32 %v921_v59, %v920_v53  ;;  %v956_v4 = vpop.f32.mrb[5].mxu0 }
 0x1ba   :  { %v957_v8 = vadd.f32 %v956_v4, %v955_v62  ;;  %v851_v62 = vld [vmem:[#allocation2] sm:$0x1] }
 0x1bb   :  { %v423_v11 = vadd.f32 %v922_v1, %v351_v56 }
 0x1bd   :  { %v493_v14 = vadd.f32 %v957_v8, %v423_v11 }
 0x1bf   :  { %v562_v20 = vpop.f32.mrb[4].mxu1 }
 0x1c0   :  { %v563_v23 = vadd.f32 %v562_v20, %v493_v14  ;;  %v1059_v27 = vpop.f32.mrb[5].mxu1 }
 0x1c2   :  { %v787_v30 = vsub.f32 0.0, %v563_v23 }
 0x1c4   :  { %v788_v33 = vsel %vm786_vm2, %v787_v30, %v563_v23 }
 0x1c5   :  { %v790_v38 = vand.u32 2147483647, %v788_v33  ;;  %v789_v21 = vmax.f32 %v788_v33, 0.0 }
 0x1c7   :  { %v791_v42 = vsub.f32 0.0, %v790_v38 }
 0x1c9   :  { %v792_v46 = vmul.f32 1.442695, %v791_v42 }
 0x1cb   :  { %1239 = vpow2.f32 %v792_v46 }
 0x1d5   :  { %v1240_v49 = vpop.eup %1239 }
 0x1d6   :  { %v794_v51 = vadd.f32 1.0, %v1240_v49 }
 0x1d8   :  { %v995_v55 = vpop.f32.mrb[6].mxu0  ;;  %1241 = vlog2.f32 %v794_v51 }
 0x1d9   :  { %v996_v60 = vpop.f32.mrb[7].mxu0  ;;  %1243 = vrsqrt.f32 %v805_v34 }
 0x1da   :  { %v997_v61 = vadd.f32 %v996_v60, %v995_v55 }
 0x1df   :  { %v1030_v3 = vpop.f32.mrb[6].mxu1 }
 0x1e0   :  { %v1031_v10 = vpop.f32.mrb[7].mxu1  ;;  %v780_v12 = vpop.f32.mrb[8].mxu0 }
 0x1e1   :  { %v1032_v15 = vadd.f32 %v1031_v10, %v1030_v3  ;;  %v1070_v16 = vpop.f32.mrb[9].mxu0 }
 0x1e2   :  { %v1242_v18 = vpop.eup %1241 }
 0x1e3   :  { %v711_v19 = vadd.f32 %v1032_v15, %v997_v61  ;;  %v796_v22 = vmul.f32 0.6931472, %v1242_v18  ;;  %v1244_v35 = vpop.eup %1243 }
 0x1e4   :  { %v807_v39 = vmul.f32 %v1244_v35, %v805_v34 }
 0x1e5   :  { %v781_v25 = vadd.f32 %v780_v12, %v711_v19  ;;  %v797_v26 = vadd.f32 %v796_v22, %v789_v21 }
 0x1e6   :  { %v809_v45 = vsel %vm808_vm5, %v805_v34, %v807_v39 }
 0x1e7   :  { %v813_v28 = vsel %vm798_vm3, %v781_v25, 0.0  ;;  %v799_v29 = vsel %vm798_vm3, %v797_v26, 0.0  ;;  %1245 = vrsqrt.f32 %v781_v25  ;;  %vm827_vm6 = vcmp.eq.f32.partialorder %v781_v25, inf }
 0x1e8   :  { %814 = vadd.xlane.f32.xlu0 %v813_v28  ;;  %800 = vadd.xlane.f32.xlu1 %v799_v29  ;;  %v830_v48 = vand.u32 2147483648, %v781_v25  ;;  %vm829_vm8 = vcmp.eq.f32.partialorder %v781_v25, 0.0  ;;  %v812_v52 = vsel %vm810_vm7, %v811_v43, %v809_v45 }
 0x1f1   :  { %v1246_v36 = vpop.eup %1245 }
 0x1f2   :  { %v826_v40 = vmul.f32 %v1246_v36, %v781_v25 }
 0x1f4   :  { %v828_v47 = vsel %vm827_vm6, %v781_v25, %v826_v40 }
 0x1f5   :  { %v831_v54 = vsel %vm829_vm8, %v830_v48, %v828_v47 }
 0x1f6   :  { %v832_v0 = vadd.f32 %v831_v54, %v812_v52 }
 0x275   :  { %v815_v31 = vpop.xlane.xlu0 %814  ;;  %v801_v9 = vpop.xlane.xlu1 %800 }
 0x276   :  { %v816_v24 = vsub.f32 %v815_v31, %v781_v25 }
 0x278   :  { %v817_v32 = vmax.f32 %v816_v24, 0.0 }
 0x27a   :  { %1247 = vrsqrt.f32 %v817_v32  ;;  %vm820_vm9 = vcmp.eq.f32.partialorder %v817_v32, inf  ;;  %v823_v58 = vand.u32 2147483648, %v817_v32  ;;  %vm822_vm10 = vcmp.eq.f32.partialorder %v817_v32, 0.0 }
 0x284   :  { %v1248_v7 = vpop.eup %1247 }
 0x285   :  { %v819_v57 = vmul.f32 %v1248_v7, %v817_v32 }
 0x287   :  { %v821_v63 = vsel %vm820_vm9, %v817_v32, %v819_v57 }
 0x288   :  { %v824_v2 = vsel %vm822_vm10, %v823_v58, %v821_v63 }
 0x289   :  { %v833_v5 = vadd.f32 %v832_v0, %v824_v2 }
 0x28b   :  { %v842_v6 = vmul.f32 0.001, %v833_v5 }
 0x28d   :  { %v843_v13 = vadd.f32 %v842_v6, %v801_v9 }
 0x28f   :  { %v853_v41 = vsel %vm852_vm11, %v843_v13, 0.0 }
 0x290   :  { %v854_v44 = vrot.slane %v853_v41, 4 }
 0x292   :  { %v855_v50 = vadd.f32 %v854_v44, %v853_v41 }
 0x294   :  { %v856_v53 = vrot.slane %v855_v50, 2 }
 0x296   :  { %v857_v56 = vadd.f32 %v856_v53, %v855_v50 }
 0x298   :  { %v858_v59 = vrot.slane %v857_v56, 1 }
 0x29a   :  { %v859_v1 = vadd.f32 %v858_v59, %v857_v56 }
 0x29c   :  { %v860_v4 = vadd.f32 %v859_v1, %v851_v62 }
 0x29e   :  { %862 = vst.msk [vmem:[#allocation2] sm:$0x1] %vm849_vm4, %v860_v4 }
 0x29f   :  { %1260 = shalt.err (!%p1257_p4)
}
 0x2a0   :  { %s1261_s4 = scalar_lea.hbm %s1780_s6, 16 }
 0x2a1   :  { %p1262_p5 = scmp.ne.s32.totalorder %s1780_s6, %s1261_s4  ;;  %p1265_p6 = scmp.lt.u32.totalorder %s1261_s4, %s1780_s6 }
 0x2a3   :  { %p1267_p7 = pnand %p1265_p6, %p1262_p5 }
 0x2a5   :  { %1270 = shalt.err (!%p1267_p7)
}
 0x2a6   :  { %872 = dma.vmem_to_hbm [thread:$0]  %s870_s5, 16, %s1780_s6, [#allocation3]  }
 0x2a7   :  { %1271 = dma.done.wait [#allocation3], 16  }
 0x2a8   :  { %1272 = vsyncadd [#allocation3], 4294967280 }
 0x2a9   :  { %876 = vsyncpa [#allocation3], 1 }

</bundles_post_ra>
